<compile_context>
chip_gen: v6e
topology: v6e:2x2x1
jax: 0.10.0
libtpu: 0.0.40
codegen_flags: <defaults>
</compile_context>

<pallas_src>
import jax
import jax.numpy as jnp
import numpy as np
from jax.experimental import pallas as pl
from jax.experimental.pallas import tpu as pltpu


# ---------------------------------------------------------------------------
# Fused kernel: one (tile x K) @ (K x 128) matmul, ReLU, one (tile x 128) @
# (128 x 128) matmul, ReLU.  Everything affine upstream was folded at prep.
# ---------------------------------------------------------------------------
def emb_lookup_kernel(x_ref, wcat_ref, b1_ref, w2_ref, b2_ref, out_ref):
    # Layer 1: folded [conv stack -> fc1 -> concat -> cb1] as a single matmul.
    h1 = jnp.dot(x_ref[...], wcat_ref[...], preferred_element_type=jnp.float32)
    h1 = jnp.maximum(h1 + b1_ref[...], 0.0)
    # TODO(synk): nn.Dropout(p=0.001) treated as identity (inference / eval mode).
    # Layer 2: cb2 (padded to 128x128 lanes; padded rows/cols are zero).
    out = jnp.dot(h1.astype(w2_ref.dtype), w2_ref[...],
                  preferred_element_type=jnp.float32)
    out_ref[...] = jnp.maximum(out + b2_ref[...], 0.0)


# ---------------------------------------------------------------------------
# Weight-side preparation (runs once; cached outside the per-call path).
# All folding done in float64 before the final cast to bf16.
# ---------------------------------------------------------------------------
def _avgpool2_matrix(length):
    # (length, length // 2): AvgPool1d(kernel=2, stride=2) along the length axis.
    q = np.zeros((length, length // 2), np.float64)
    m = np.arange(length // 2)
    q[2 * m, m] = 0.5
    q[2 * m + 1, m] = 0.5
    return q


def _conv_pool_matrix(w, seq):
    # w: (Cout, Cin, 3) Conv1d weight (k=3, stride=1, pad=1, no bias).
    # Returns (Cin*seq, Cout*(seq//2)): 'same' conv along length followed by
    # AvgPool1d(2), as a banded block matrix on a (channel, length)-flattened
    # feature axis.  kron(w_t.T, S_t) places tap t on the l = l' + t - 1 band.
    w = np.asarray(w, np.float64)
    q = _avgpool2_matrix(seq)
    return sum(
        np.kron(w[:, :, t].T, np.eye(seq, k=1 - t, dtype=np.float64) @ q)
        for t in range(3)
    )


def prepare_params(p, *, alphabet_size, max_string_length, channel_size,
                   embedding_dimension, lane_pad=128, weight_dtype=jnp.bfloat16):
    """Precompute all weight-side constants for the fused kernel (call once)."""
    A, L, C, E = alphabet_size, max_string_length, channel_size, embedding_dimension
    assert L % 8 == 0, "max_string_length must be divisible by 8 (3x AvgPool1d(2))"
    flat = A * C * (L // 8)
    eye_a = np.eye(A, dtype=np.float64)

    # Per-stage conv+pool matrices (block-diagonal over the alias axis) — only
    # used here at prep time; they never enter the kernel or VMEM.
    c1 = np.kron(eye_a, _conv_pool_matrix(np.asarray(p["conv1_w"]), L))
    c2 = np.kron(eye_a, _conv_pool_matrix(np.asarray(p["conv2_w"]), L // 2))
    c3 = np.kron(eye_a, _conv_pool_matrix(np.asarray(p["conv3_w"]), L // 4))

    fc1_w = np.asarray(p["fc1_w"], np.float64)            # (E, flat), (a,c,l) order
    fc1_b = np.asarray(p["fc1_b"], np.float64)            # (E,)
    assert fc1_w.shape == (E, flat)

    cb1_w = np.asarray(p["cb1_w"], np.float64)             # (96, 128)
    cb1_b = np.asarray(p["cb1_b"], np.float64)             # (96,)
    cb2_w = np.asarray(p["cb2_w"], np.float64)             # (64, 96)
    cb2_b = np.asarray(p["cb2_b"], np.float64)             # (64,)
    h1_dim, in_dim = cb1_w.shape
    out_dim = cb2_w.shape[0]
    F = in_dim - E
    h1_pad = max(lane_pad, h1_dim)
    out_pad = max(lane_pad, out_dim)

    w1a = cb1_w[:, :E].T                                   # (E, 96)  emb half
    w1b = cb1_w[:, E:].T                                    # (F, 96)  fasttext half

    # Full affine fold (f64): conv stack -> fc1 -> emb-half of cb1.
    wx = c1 @ c2 @ c3 @ fc1_w.T @ w1a                      # (A*L, 96)
    b1 = fc1_b @ w1a + cb1_b                               # (96,)

    # Stack the folded alias matrix over the fasttext half -> one first-layer
    # matmul on the host-concatenated input; pad hidden/out to 128 lanes with
    # zero weights/bias so stores are lane-dense.
    K = A * L + F
    w_cat = np.zeros((K, h1_pad), np.float64)
    w_cat[:A * L, :h1_dim] = wx
    w_cat[A * L:, :h1_dim] = w1b
    b1_p = np.zeros((1, h1_pad), np.float32)
    b1_p[0, :h1_dim] = b1
    w2 = np.zeros((h1_pad, out_pad), np.float64)
    w2[:h1_dim, :out_dim] = cb2_w.T
    b2_p = np.zeros((1, out_pad), np.float32)
    b2_p[0, :out_dim] = cb2_b

    prep = dict(
        w_cat=jnp.asarray(w_cat.astype(np.float32), dtype=weight_dtype),
        b1=jnp.asarray(b1_p),                              # biases stay f32
        w2=jnp.asarray(w2.astype(np.float32), dtype=weight_dtype),
        b2=jnp.asarray(b2_p),
    )
    prep["out_dim"] = out_dim
    prep["fasttext_dim"] = F
    prep["alias_feat"] = A * L
    return prep


def _round_up(x, m):
    return ((x + m - 1) // m) * m


# ---------------------------------------------------------------------------
# pallas_call wrapper
# ---------------------------------------------------------------------------
def emb_lookup_forward(alias, fasttext, prep, *, batch_tile=256):
    """EmbLookupNNModel.forward. alias: (N, A, L) f32, fasttext: (N, F) f32.

    batch_tile: 128-256 on v5e, 512-1024 on v6e, 256-384 on v7x (keep >=2 grid
    steps on v7x so the "parallel" axis shards across both TensorCores).
    """
    N, A, L = alias.shape
    F = prep["fasttext_dim"]
    assert fasttext.shape == (N, F)
    assert A * L == prep["alias_feat"]
    K = A * L + F

    act_dtype = prep["w_cat"].dtype
    # Host-side glue: flatten (a, l) onto lanes, concat with fasttext, cast.
    x_cat = jnp.concatenate(
        [alias.reshape(N, A * L).astype(jnp.float32),
         fasttext.astype(jnp.float32)], axis=1).astype(act_dtype)

    # Pad rows to a multiple of 16 (bf16 sublane packing) and to a whole number
    # of batch tiles so every block is sublane-dense (unmasked loads/stores).
    ROW = 16
    n_pad = _round_up(max(N, ROW), ROW)
    tn = min(_round_up(batch_tile, ROW), n_pad)
    grid_n = pl.cdiv(n_pad, tn)
    n_pad = grid_n * tn
    if n_pad != N:
        x_cat = jnp.pad(x_cat, ((0, n_pad - N), (0, 0)))

    h1_pad = prep["b1"].shape[1]
    out_pad = prep["b2"].shape[1]
    weights = (prep["w_cat"], prep["b1"], prep["w2"], prep["b2"])

    def resident(arr):
        nd = arr.ndim
        return pl.BlockSpec(arr.shape, lambda i: (0,) * nd)

    bytes_w = sum(int(np.prod(w.shape)) * w.dtype.itemsize for w in weights)
    cost = pl.CostEstimate(
        flops=int(2 * n_pad * (K * h1_pad + h1_pad * out_pad)),
        transcendentals=0,
        bytes_accessed=int(n_pad * K * x_cat.dtype.itemsize
                           + bytes_w + n_pad * out_pad * 4),
    )

    out = pl.pallas_call(
        emb_lookup_kernel,
        out_shape=jax.ShapeDtypeStruct((n_pad, out_pad), jnp.float32),
        grid=(grid_n,),
        in_specs=[pl.BlockSpec((tn, K), lambda i: (i, 0))]
                 + [resident(w) for w in weights],
        out_specs=pl.BlockSpec((tn, out_pad), lambda i: (i, 0)),
        compiler_params=pltpu.CompilerParams(
            dimension_semantics=("parallel",),
            vmem_limit_bytes=48 * 1024 * 1024),
        cost_estimate=cost,
    )(x_cat, *weights)
    # NOTE: consumers that can read the padded (n_pad, 128) buffer directly
    # should skip this slice; it exists only to present the module's shape.
    return out[:N, :prep["out_dim"]]


# ---------------------------------------------------------------------------
# Pure-JAX reference (mirrors the PyTorch forward exactly, f32)
# ---------------------------------------------------------------------------
def reference_forward(alias, ft, p):
    N, A, L = alias.shape
    hp = jax.lax.Precision.HIGHEST
    x = alias.reshape(N * A, 1, L)

    def conv(x, w):
        return jax.lax.conv_general_dilated(
            x, w, window_strides=(1,), padding=((1, 1),),
            dimension_numbers=("NCH", "OIH", "NCH"), precision=hp)

    def avgpool(x):
        return 0.5 * (x[:, :, 0::2] + x[:, :, 1::2])

    x = avgpool(conv(x, p["conv1_w"]))
    x = avgpool(conv(x, p["conv2_w"]))
    x = avgpool(conv(x, p["conv3_w"]))
    x = x.reshape(N, -1)
    emb = jnp.dot(x, p["fc1_w"].T, precision=hp) + p["fc1_b"]
    o = jnp.concatenate([emb, ft], axis=1)
    h1 = jnp.maximum(jnp.dot(o, p["cb1_w"].T, precision=hp) + p["cb1_b"], 0.0)
    return jnp.maximum(jnp.dot(h1, p["cb2_w"].T, precision=hp) + p["cb2_b"], 0.0)


# ---------------------------------------------------------------------------
if __name__ == "__main__":
    # Small config: max_string_length=16, alphabet_size=4, channel_size=8,
    # embedding_dimension=64, fasttext dim = 128 - 64 = 64, batch N=2.
    N, A, L, C, E = 2, 4, 16, 8, 64
    F = 128 - E
    flat = (L // 8) * A * C

    key = jax.random.PRNGKey(0)
    ks = jax.random.split(key, 11)
    alias = jax.random.normal(ks[0], (N, A, L), jnp.float32)
    ft = jax.random.normal(ks[1], (N, F), jnp.float32)

    params = dict(
        conv1_w=0.3 * jax.random.normal(ks[2], (C, 1, 3), jnp.float32),
        conv2_w=0.2 * jax.random.normal(ks[3], (C, C, 3), jnp.float32),
        conv3_w=0.2 * jax.random.normal(ks[4], (C, C, 3), jnp.float32),
        fc1_w=0.1 * jax.random.normal(ks[5], (E, flat), jnp.float32),
        fc1_b=0.1 * jax.random.normal(ks[6], (E,), jnp.float32),
        cb1_w=0.1 * jax.random.normal(ks[7], (96, 128), jnp.float32),
        cb1_b=0.1 * jax.random.normal(ks[8], (96,), jnp.float32),
        cb2_w=0.1 * jax.random.normal(ks[9], (64, 96), jnp.float32),
        cb2_b=0.1 * jax.random.normal(ks[10], (64,), jnp.float32),
    )

    # Weight-side glue: affine fold done ONCE (f64) then cast to bf16.
    prep = prepare_params(params, alphabet_size=A, max_string_length=L,
                          channel_size=C, embedding_dimension=E)

    out = emb_lookup_forward(alias, ft, prep)
    out = jax.block_until_ready(out)

    ref = reference_forward(alias, ft, params)
    # bf16 matmul operands (f32 accumulation) -> slightly looser tolerance.
    np.testing.assert_allclose(np.asarray(out), np.asarray(ref), rtol=5e-2, atol=5e-2)
    assert out.shape == (N, 64) and out.dtype == jnp.float32

    print("KERNEL_OK")
</pallas_src>

<mosaic_0001>
module attributes {stable_mosaic.version = 11 : i64} {
  func.func @emb_lookup_kernel(%arg0: i32, %arg1: memref<16x128xbf16, #tpu.memory_space<vmem>>, %arg2: memref<128x128xbf16, #tpu.memory_space<vmem>>, %arg3: memref<1x128xf32, #tpu.memory_space<vmem>>, %arg4: memref<128x128xbf16, #tpu.memory_space<vmem>>, %arg5: memref<1x128xf32, #tpu.memory_space<vmem>>, %arg6: memref<16x128xf32, #tpu.memory_space<vmem>>) attributes {dimension_semantics = [#tpu.dimension_semantics<parallel>], iteration_bounds = array<i64: 1>, scalar_prefetch = 0 : i64, scratch_operands = 0 : i64, tpu.core_type = #tpu.core_type<tc>, window_params = [{transform_indices = @transform_0, window_bounds = array<i64: 16, 128>}, {pipeline_mode = #tpu.pipeline_mode<synchronous>, transform_indices = @transform_1, window_bounds = array<i64: 128, 128>}, {pipeline_mode = #tpu.pipeline_mode<synchronous>, transform_indices = @transform_2, window_bounds = array<i64: 1, 128>}, {pipeline_mode = #tpu.pipeline_mode<synchronous>, transform_indices = @transform_3, window_bounds = array<i64: 128, 128>}, {pipeline_mode = #tpu.pipeline_mode<synchronous>, transform_indices = @transform_4, window_bounds = array<i64: 1, 128>}, {transform_indices = @transform_5, window_bounds = array<i64: 16, 128>}]} {
    %c0 = arith.constant 0 : index
    %c0_0 = arith.constant 0 : index
    %0 = vector.load %arg1[%c0, %c0_0] : memref<16x128xbf16, #tpu.memory_space<vmem>>, vector<16x128xbf16>
    %c0_1 = arith.constant 0 : index
    %c0_2 = arith.constant 0 : index
    %1 = vector.load %arg2[%c0_1, %c0_2] : memref<128x128xbf16, #tpu.memory_space<vmem>>, vector<128x128xbf16>
    %cst = arith.constant dense<0.000000e+00> : vector<16x128xf32>
    %2 = tpu.matmul %0, %1, %cst {dimension_numbers = #tpu.dot_dimension_numbers<[1], [0], [0], [1], [0, 0, 1, 1], [], []>} : vector<16x128xbf16>, vector<128x128xbf16>, vector<16x128xf32> -> vector<16x128xf32>
    %c0_3 = arith.constant 0 : index
    %c0_4 = arith.constant 0 : index
    %3 = vector.load %arg3[%c0_3, %c0_4] : memref<1x128xf32, #tpu.memory_space<vmem>>, vector<1x128xf32>
    %4 = vector.broadcast %3 : vector<1x128xf32> to vector<16x128xf32>
    %5 = arith.addf %2, %4 : vector<16x128xf32>
    %cst_5 = arith.constant 0.000000e+00 : f32
    %6 = vector.broadcast %cst_5 : f32 to vector<16x128xf32>
    %7 = arith.maximumf %5, %6 : vector<16x128xf32>
    %8 = arith.truncf %7 : vector<16x128xf32> to vector<16x128xbf16>
    %c0_6 = arith.constant 0 : index
    %c0_7 = arith.constant 0 : index
    %9 = vector.load %arg4[%c0_6, %c0_7] : memref<128x128xbf16, #tpu.memory_space<vmem>>, vector<128x128xbf16>
    %cst_8 = arith.constant dense<0.000000e+00> : vector<16x128xf32>
    %10 = tpu.matmul %8, %9, %cst_8 {dimension_numbers = #tpu.dot_dimension_numbers<[1], [0], [0], [1], [0, 0, 1, 1], [], []>} : vector<16x128xbf16>, vector<128x128xbf16>, vector<16x128xf32> -> vector<16x128xf32>
    %c0_9 = arith.constant 0 : index
    %c0_10 = arith.constant 0 : index
    %11 = vector.load %arg5[%c0_9, %c0_10] : memref<1x128xf32, #tpu.memory_space<vmem>>, vector<1x128xf32>
    %12 = vector.broadcast %11 : vector<1x128xf32> to vector<16x128xf32>
    %13 = arith.addf %10, %12 : vector<16x128xf32>
    %cst_11 = arith.constant 0.000000e+00 : f32
    %14 = vector.broadcast %cst_11 : f32 to vector<16x128xf32>
    %15 = arith.maximumf %13, %14 : vector<16x128xf32>
    %c0_12 = arith.constant 0 : index
    %c0_13 = arith.constant 0 : index
    %16 = vector.load %arg6[%c0_12, %c0_13] : memref<16x128xf32, #tpu.memory_space<vmem>>, vector<16x128xf32>
    tpu.vector_store %arg6[%c0_12, %c0_13], %15 {strides = array<i32>} : memref<16x128xf32, #tpu.memory_space<vmem>>, vector<16x128xf32>,
    return
  }
  func.func @transform_0(%arg0: i32) -> (i32, i32) {
    %c0_i32 = arith.constant 0 : i32
    %c0_i32_0 = arith.constant 0 : i32
    return %arg0, %c0_i32 : i32, i32
  }
  func.func @transform_1(%arg0: i32) -> (i32, i32) {
    %c0_i32 = arith.constant 0 : i32
    %c0_i32_0 = arith.constant 0 : i32
    %c0_i32_1 = arith.constant 0 : i32
    return %c0_i32, %c0_i32_0 : i32, i32
  }
  func.func @transform_2(%arg0: i32) -> (i32, i32) {
    %c0_i32 = arith.constant 0 : i32
    %c0_i32_0 = arith.constant 0 : i32
    %c0_i32_1 = arith.constant 0 : i32
    return %c0_i32, %c0_i32_0 : i32, i32
  }
  func.func @transform_3(%arg0: i32) -> (i32, i32) {
    %c0_i32 = arith.constant 0 : i32
    %c0_i32_0 = arith.constant 0 : i32
    %c0_i32_1 = arith.constant 0 : i32
    return %c0_i32, %c0_i32_0 : i32, i32
  }
  func.func @transform_4(%arg0: i32) -> (i32, i32) {
    %c0_i32 = arith.constant 0 : i32
    %c0_i32_0 = arith.constant 0 : i32
    %c0_i32_1 = arith.constant 0 : i32
    return %c0_i32, %c0_i32_0 : i32, i32
  }
  func.func @transform_5(%arg0: i32) -> (i32, i32) {
    %c0_i32 = arith.constant 0 : i32
    %c0_i32_0 = arith.constant 0 : i32
    return %arg0, %c0_i32 : i32, i32
  }
}

</mosaic_0001>

<bundles_post_ra>
// kernel: tpu_custom_call.1
= control target key start
LH: loop header
LB: loop body
LE: loop exit
PB: predicated region body
PF: predicated region fallthrough
CT: control target
= control target key end

     0   :  { %10 = vsyncpa [#allocation3], 0  ;;  %s568_s0 = inlined_call_operand.hbm [shape: bf16[16,128], index: 0, kind: input, shape index: {}]   ;;  %s569_s1 = inlined_call_operand.hbm [shape: bf16[128,128], index: 1, kind: input, shape index: {}]   ;;  %s570_s2 = inlined_call_operand.vmem [shape: f32[1,128], index: 2, kind: input, shape index: {}]   ;;  %s571_s3 = inlined_call_operand.hbm [shape: bf16[128,128], index: 3, kind: input, shape index: {}]   ;;  %s572_s4 = inlined_call_operand.vmem [shape: f32[1,128], index: 4, kind: input, shape index: {}]   ;;  %s573_s5 = inlined_call_operand.hbm [shape: f32[16,128], index: 5, kind: output, shape index: {}]  }
   0x1   :  { %11 = vsyncpa [#allocation6], 0 }
   0x2   :  { %12 = vsyncpa [#allocation4], 0  ;;  %s510_s18 = smov [#allocation5]   ;;  %s511_s20 = smov [#allocation2]  }
   0x3   :  { %s30_s19 = sshll.u32 %s510_s18, 4  ;;  %s18_s21 = sshll.u32 %s511_s20, 4  ;;  %s31_s19 = int_to_ptr.vmem [resolvable:$true] %s30_s19  ;;  %s19_s21 = int_to_ptr.vmem [resolvable:$true] %s18_s21 }
   0x4   :  { %s432_s22 = scalar_lea.vmem %s31_s19, 1024  ;;  %p437_p1 = scmp.lt.s32.totalorder %s31_s19, %s31_s19 }
   0x5   :  { %p433_p0 = scmp.ne.s32.totalorder %s31_s19, %s432_s22  ;;  %p438_p2 = scmp.lt.s32.totalorder %s432_s22, %s432_s22 }
   0x7   :  { %p439_p3 = por %p438_p2, %p437_p1 }
   0x9   :  { %p440_p4 = pnand %p439_p3, %p433_p0 }
   0xb   :  { %443 = shalt.err (!%p440_p4)
}
   0xc   :  { %s512_s23 = smov 64   ;;  %s513_s24 = smov 4  }
   0xd   :  { %36 = dma.hbm_to_vmem [thread:$0]  %s569_s1, 1024, %s31_s19, [#allocation6], %s512_s23, %s512_s23, %s513_s24  }
   0xe   :  { %s452_s27 = scalar_lea.vmem %s19_s21, 128  ;;  %p457_p6 = scmp.lt.s32.totalorder %s19_s21, %s19_s21 }
   0xf   :  { %p453_p5 = scmp.ne.s32.totalorder %s19_s21, %s452_s27  ;;  %p458_p7 = scmp.lt.s32.totalorder %s452_s27, %s452_s27 }
  0x11   :  { %p459_p8 = por %p458_p7, %p457_p6 }
  0x13   :  { %p460_p9 = pnand %p459_p8, %p453_p5 }
  0x15   :  { %463 = shalt.err (!%p460_p9)
}
  0x16   :  { %24 = dma.hbm_to_vmem [thread:$0]  %s568_s0, 128, %s19_s21, [#allocation3], %s512_s23, %s512_s23, %s513_s24  }
  0x17   :  { %s514_s30 = smov [#allocation7]  }
  0x18   :  { %s44_s6 = sshll.u32 %s514_s30, 4  ;;  %s45_s6 = int_to_ptr.vmem [resolvable:$true] %s44_s6 }
  0x19   :  { %s472_s7 = scalar_lea.vmem %s45_s6, 1024  ;;  %p477_p11 = scmp.lt.s32.totalorder %s45_s6, %s45_s6 }
  0x1a   :  { %p473_p10 = scmp.ne.s32.totalorder %s45_s6, %s472_s7  ;;  %p478_p12 = scmp.lt.s32.totalorder %s472_s7, %s472_s7 }
  0x1c   :  { %p479_p13 = por %p478_p12, %p477_p11 }
  0x1e   :  { %p480_p0 = pnand %p479_p13, %p473_p10 }
  0x20   :  { %483 = shalt.err (!%p480_p0)
}
  0x21   :  { %50 = dma.hbm_to_vmem [thread:$0]  %s571_s3, 1024, %s45_s6, [#allocation6], %s512_s23, %s512_s23, %s513_s24  }
  0x22   :  { %504 = dma.done.wait [#allocation3], 128  }
  0x23   :  { %505 = vsyncadd [#allocation3], 4294967168 }
  0x24   :  { %506 = dma.done.wait [#allocation6], 2048  }
  0x25   :  { %507 = vsyncadd [#allocation6], 4294965248  ;;  %v515_v0 = vmov 0.0   ;;  %vm516_vm0 = vmmov 0   ;;  %v407_v1 = vld [vmem:[#allocation5 + $0x38] sm:$0xff]   ;;  %v408_v2 = vld [vmem:[#allocation5 + $0x30] sm:$0xff]  }
  0x26   :  { %357 = vmatprep.subr.bf16.mxu0 %v515_v0  ;;  %373 = vmatprep.mubr.msk.bf16.mxu0 %vm516_vm0, %v515_v0  ;;  %v409_v3 = vld [vmem:[#allocation5 + $0x28] sm:$0xff]   ;;  %v416_v4 = vld [vmem:[#allocation7 + $0x38] sm:$0xff]   ;;  %v410_v5 = vld [vmem:[#allocation5 + $0x20] sm:$0xff]   ;;  %s517_s11 = smov [#allocation8]  }
  0x27   :  { %377 = vmatprep.subr.bf16.mxu1 %v515_v0  ;;  %393 = vmatprep.mubr.msk.bf16.mxu1 %vm516_vm0, %v515_v0  ;;  %v417_v6 = vld [vmem:[#allocation7 + $0x30] sm:$0xff]   ;;  %v411_v7 = vld [vmem:[#allocation5 + $0x18] sm:$0xff]   ;;  %v418_v8 = vld [vmem:[#allocation7 + $0x28] sm:$0xff]  }
  0x28   :  { %358 = vmatpush3.bf16.msra.mxu0 %v407_v1  ;;  %378 = vmatpush3.bf16.msra.mxu1 %v416_v4  ;;  %v412_v9 = vld [vmem:[#allocation5 + $0x10] sm:$0xff]   ;;  %v419_v10 = vld [vmem:[#allocation7 + $0x20] sm:$0xff]   ;;  %v413_v11 = vld [vmem:[#allocation5 + $0x8] sm:$0xff]  }
  0x29   :  { %359 = vmatprep.subr.bf16.mxu0 %v515_v0  ;;  %379 = vmatprep.subr.bf16.mxu1 %v515_v0  ;;  %v420_v12 = vld [vmem:[#allocation7 + $0x18] sm:$0xff]   ;;  %v414_v13 = vld [vmem:[#allocation5] sm:$0xff]   ;;  %v421_v15 = vld [vmem:[#allocation7 + $0x10] sm:$0xff]  }
  0x2a   :  { %v415_v14 = vld [vmem:[#allocation2] sm:$0xff]   ;;  %v422_v16 = vld [vmem:[#allocation7 + $0x8] sm:$0xff]   ;;  %v423_v17 = vld [vmem:[#allocation7] sm:$0xff]  }
  0x2b   :  { %v320_v18 = vld [vmem:[%s570_s2] ss:$0 sm:$0xff]  ;;  %s307_s2 = sshll.u32 %s517_s11, 4  ;;  %s308_s2 = int_to_ptr.vmem [resolvable:$true] %s307_s2 }
  0x2c   :  { %360 = vmatpush3.bf16.msra.mxu0 %v408_v2  ;;  %380 = vmatpush3.bf16.msra.mxu1 %v417_v6  ;;  %v330_v28 = vld [vmem:[%s572_s4] ss:$0 sm:$0xff]  ;;  %s484_s12 = scalar_lea.vmem %s308_s2, 256  ;;  %p489_p2 = scmp.lt.s32.totalorder %s308_s2, %s308_s2 }
  0x2d   :  { %361 = vmatprep.subr.bf16.mxu0 %v515_v0  ;;  %381 = vmatprep.subr.bf16.mxu1 %v515_v0  ;;  %p485_p1 = scmp.ne.s32.totalorder %s308_s2, %s484_s12  ;;  %p490_p3 = scmp.lt.s32.totalorder %s484_s12, %s484_s12 }
  0x2f   :  { %p491_p4 = por %p490_p3, %p489_p2 }
  0x30   :  { %362 = vmatpush3.bf16.msra.mxu0 %v409_v3  ;;  %382 = vmatpush3.bf16.msra.mxu1 %v418_v8 }
  0x31   :  { %363 = vmatprep.subr.bf16.mxu0 %v515_v0  ;;  %383 = vmatprep.subr.bf16.mxu1 %v515_v0  ;;  %p492_p5 = pnand %p491_p4, %p485_p1 }
  0x34   :  { %364 = vmatpush3.bf16.msra.mxu0 %v410_v5  ;;  %384 = vmatpush3.bf16.msra.mxu1 %v419_v10 }
  0x35   :  { %365 = vmatprep.subr.bf16.mxu0 %v515_v0  ;;  %385 = vmatprep.subr.bf16.mxu1 %v515_v0 }
  0x38   :  { %366 = vmatpush3.bf16.msra.mxu0 %v411_v7  ;;  %386 = vmatpush3.bf16.msra.mxu1 %v420_v12 }
  0x39   :  { %367 = vmatprep.subr.bf16.mxu0 %v515_v0  ;;  %387 = vmatprep.subr.bf16.mxu1 %v515_v0 }
  0x3c   :  { %368 = vmatpush3.bf16.msra.mxu0 %v412_v9  ;;  %388 = vmatpush3.bf16.msra.mxu1 %v421_v15 }
  0x3d   :  { %369 = vmatprep.subr.bf16.mxu0 %v515_v0  ;;  %389 = vmatprep.subr.bf16.mxu1 %v515_v0 }
  0x40   :  { %370 = vmatpush3.bf16.msra.mxu0 %v413_v11  ;;  %390 = vmatpush3.bf16.msra.mxu1 %v422_v16 }
  0x41   :  { %371 = vmatprep.subr.bf16.mxu0 %v515_v0  ;;  %391 = vmatprep.subr.bf16.mxu1 %v515_v0 }
  0x44   :  { %372 = vmatpush3.bf16.msra.mxu0 %v414_v13  ;;  %392 = vmatpush3.bf16.msra.mxu1 %v423_v17 }
  0x47   :  { %374 = vmatmul.mubr.bf16.vlgmr.msra.gmra.mxu0 %v415_v14 }
 0x107   :  { %v176_v19 = vpop.f32.mrf.mxu0 }
 0x108   :  { %v177_v21 = vadd.f32 %v320_v18, %v176_v19 }
 0x109   :  { %v375_v20 = vpop.f32.mrf.mxu0 }
 0x10a   :  { %v183_v25 = vmax.f32 %v177_v21, 0.0 }
 0x10b   :  { %v179_v22 = vpop.f32.mrf.mxu0 }
 0x10c   :  { %v180_v23 = vadd.f32 %v320_v18, %v179_v22 }
 0x10d   :  { %v376_v24 = vpop.f32.mrf.mxu0 }
 0x10e   :  { %v184_v26 = vmax.f32 %v180_v23, 0.0 }
 0x110   :  { %v185_v27 = vpack.c.bf16 %v184_v26, %v183_v25 }
 0x112   :  { %394 = vmatmul.mubr.bf16.vlgmr.msra.gmra.mxu1 %v185_v27 }
 0x1d2   :  { %v291_v29 = vpop.f32.mrf.mxu1 }
 0x1d3   :  { %v292_v30 = vadd.f32 %v330_v28, %v291_v29 }
 0x1d4   :  { %v395_v31 = vpop.f32.mrf.mxu1 }
 0x1d5   :  { %v298_v32 = vmax.f32 %v292_v30, 0.0 }
 0x1d6   :  { %v294_v33 = vpop.f32.mrf.mxu1 }
 0x1d7   :  { %300 = vst [vmem:[#allocation8] sm:$0xff] %v298_v32  ;;  %v295_v34 = vadd.f32 %v330_v28, %v294_v33 }
 0x1d8   :  { %v396_v35 = vpop.f32.mrf.mxu1 }
 0x1d9   :  { %v299_v36 = vmax.f32 %v295_v34, 0.0 }
 0x1db   :  { %301 = vst [vmem:[#allocation8 + $0x8] sm:$0xff] %v299_v36 }
 0x1dc   :  { %495 = shalt.err (!%p492_p5)
}
 0x1dd   :  { %s518_s4 = smov 128   ;;  %s519_s13 = smov 8  }
 0x1de   :  { %313 = dma.vmem_to_hbm [thread:$0]  %s308_s2, 256, %s573_s5, [#allocation4], %s518_s4, %s518_s4, %s519_s13  }
 0x1df   :  { %508 = dma.done.wait [#allocation4], 256  }
 0x1e0   :  { %509 = vsyncadd [#allocation4], 4294967040 }
 0x1e1   :  { %317 = vsyncpa [#allocation3], 1 }
 0x1e2   :  { %318 = vsyncpa [#allocation6], 1 }
 0x1e3   :  { %319 = vsyncpa [#allocation4], 1 }

</bundles_post_ra>
